<compile_context>
chip_gen: v5e
topology: v5e:2x2
jax: 0.10.0
libtpu: 0.0.40
codegen_flags: <defaults>
</compile_context>

<pallas_src>
import jax
import jax.numpy as jnp
import numpy as np
from jax import lax
from jax.experimental import pallas as pl
from jax.experimental.pallas import tpu as pltpu

EPS = 1e-5
LANE = 128          # Cout padding: lane-dense, unmasked output stores
KPAD = 16           # contraction-dim padding: bf16 sublane multiple only
NUM_SHARDS = 2      # leading "parallel" grid axis for v7x's 2 TensorCores


def _tpu_defaults():
    """Per-generation tile size and VMEM limit (v7x has 64 MiB/TC)."""
    vmem = 128 << 20
    try:
        info = pltpu.get_tpu_info()
        v = getattr(info, "vmem_capacity_bytes", None)
        if v:
            vmem = int(v)
    except Exception:
        pass
    tile_m = 1024 if vmem >= (100 << 20) else 512
    vmem_limit = min(int(vmem * 3 // 4), 96 << 20)
    return tile_m, vmem_limit


_DEFAULT_TILE_M, _VMEM_LIMIT = _tpu_defaults()


# ------------------------- Pallas kernels -------------------------

def _accumulate_stats(stats_ref, y):
    """Accumulate per-channel sum (row 0) and sum-of-squares (row 1) in f32."""
    stats_ref[0:1, :] += jnp.sum(y, axis=0, keepdims=True)
    stats_ref[1:2, :] += jnp.sum(y * y, axis=0, keepdims=True)


def matmul_stats_kernel(x_ref, w_ref, y_ref, stats_ref):
    """conv as im2col matmul (bf16 operands, f32 accum) + BN batch statistics."""
    @pl.when(pl.program_id(1) == 0)
    def _():
        stats_ref[...] = jnp.zeros_like(stats_ref)

    y = jnp.dot(x_ref[...], w_ref[...], preferred_element_type=jnp.float32)
    y_ref[...] = y.astype(y_ref.dtype)          # bf16 writeback (half the HBM)
    _accumulate_stats(stats_ref, y)             # stats from the f32 accumulator


def dual_matmul_stats_kernel(x2_ref, w2_ref, xd_ref, wd_ref,
                             y2_ref, yd_ref, s2_ref, sd_ref):
    """conv2 matmul + downsample 1x1 matmul in one pass over M, each with stats."""
    @pl.when(pl.program_id(1) == 0)
    def _():
        s2_ref[...] = jnp.zeros_like(s2_ref)
        sd_ref[...] = jnp.zeros_like(sd_ref)

    y2 = jnp.dot(x2_ref[...], w2_ref[...], preferred_element_type=jnp.float32)
    yd = jnp.dot(xd_ref[...], wd_ref[...], preferred_element_type=jnp.float32)
    y2_ref[...] = y2.astype(y2_ref.dtype)
    yd_ref[...] = yd.astype(yd_ref.dtype)
    _accumulate_stats(s2_ref, y2)
    _accumulate_stats(sd_ref, yd)


def scale_shift_relu_kernel(y_ref, sc_ref, sh_ref, o_ref):
    """bn1 apply + ReLU: bf16 in / bf16 out, f32 math, folded scale/shift."""
    y = y_ref[...].astype(jnp.float32)
    o_ref[...] = jnp.maximum(y * sc_ref[...] + sh_ref[...], 0.0).astype(o_ref.dtype)


def tail_kernel(y2_ref, sc2_ref, sh2_ref, res_ref, scr_ref, shr_ref, o_ref):
    """bn2 apply + residual (identity: scale=1/shift=0, downsample: its BN) + ReLU."""
    y2 = y2_ref[...].astype(jnp.float32)
    r = res_ref[...].astype(jnp.float32)
    out = y2 * sc2_ref[...] + sh2_ref[...] + r * scr_ref[...] + shr_ref[...]
    o_ref[...] = jnp.maximum(out, 0.0).astype(o_ref.dtype)


# ------------------------- pallas_call plumbing -------------------------

def _cparams(semantics):
    return pltpu.CompilerParams(dimension_semantics=semantics,
                                vmem_limit_bytes=_VMEM_LIMIT)


def _row_spec(tm, cols):           # streamed over M tiles (1-D grid)
    return pl.BlockSpec((tm, cols), lambda i: (i, 0))


def _vec_spec(cols):               # resident (1, cols) vector
    return pl.BlockSpec((1, cols), lambda i: (0, 0))


def _grid_shards(num_tiles):
    if num_tiles % NUM_SHARDS == 0 and num_tiles >= NUM_SHARDS:
        return NUM_SHARDS, num_tiles // NUM_SHARDS
    return 1, num_tiles


def _matmul_stats(xp, wp, tm):
    mp, kp = xp.shape
    coutp = wp.shape[1]
    s, t = _grid_shards(mp // tm)
    row = lambda c, i: (c * t + i, 0)
    rep = lambda c, i: (0, 0)
    stat = lambda c, i: (c, 0)
    y, stats = pl.pallas_call(
        matmul_stats_kernel,
        out_shape=(jax.ShapeDtypeStruct((mp, coutp), jnp.bfloat16),
                   jax.ShapeDtypeStruct((s * 8, coutp), jnp.float32)),
        grid=(s, t),
        in_specs=[pl.BlockSpec((tm, kp), row), pl.BlockSpec((kp, coutp), rep)],
        out_specs=(pl.BlockSpec((tm, coutp), row), pl.BlockSpec((8, coutp), stat)),
        compiler_params=_cparams(("parallel", "arbitrary")),
    )(xp, wp)
    stats = stats.reshape(s, 8, coutp)[:, :2, :].sum(axis=0)   # reduce shards
    return y, stats


def _dual_matmul_stats(x2p, w2p, xdp, wdp, tm):
    mp, k2p = x2p.shape
    kdp = xdp.shape[1]
    coutp = w2p.shape[1]
    s, t = _grid_shards(mp // tm)
    row = lambda c, i: (c * t + i, 0)
    rep = lambda c, i: (0, 0)
    stat = lambda c, i: (c, 0)
    y2, yd, s2, sd = pl.pallas_call(
        dual_matmul_stats_kernel,
        out_shape=(jax.ShapeDtypeStruct((mp, coutp), jnp.bfloat16),
                   jax.ShapeDtypeStruct((mp, coutp), jnp.bfloat16),
                   jax.ShapeDtypeStruct((s * 8, coutp), jnp.float32),
                   jax.ShapeDtypeStruct((s * 8, coutp), jnp.float32)),
        grid=(s, t),
        in_specs=[pl.BlockSpec((tm, k2p), row), pl.BlockSpec((k2p, coutp), rep),
                  pl.BlockSpec((tm, kdp), row), pl.BlockSpec((kdp, coutp), rep)],
        out_specs=(pl.BlockSpec((tm, coutp), row), pl.BlockSpec((tm, coutp), row),
                   pl.BlockSpec((8, coutp), stat), pl.BlockSpec((8, coutp), stat)),
        compiler_params=_cparams(("parallel", "arbitrary")),
    )(x2p, w2p, xdp, wdp)
    s2 = s2.reshape(s, 8, coutp)[:, :2, :].sum(axis=0)
    sd = sd.reshape(s, 8, coutp)[:, :2, :].sum(axis=0)
    return y2, yd, s2, sd


def _scale_shift_relu(y, scale, shift, tm):
    mp, coutp = y.shape
    return pl.pallas_call(
        scale_shift_relu_kernel,
        out_shape=jax.ShapeDtypeStruct((mp, coutp), jnp.bfloat16),
        grid=(mp // tm,),
        in_specs=[_row_spec(tm, coutp), _vec_spec(coutp), _vec_spec(coutp)],
        out_specs=_row_spec(tm, coutp),
        compiler_params=_cparams(("parallel",)),
    )(y, scale, shift)


def _tail(y2, sc2, sh2, res, scr, shr, tm):
    mp, coutp = y2.shape
    return pl.pallas_call(
        tail_kernel,
        out_shape=jax.ShapeDtypeStruct((mp, coutp), jnp.bfloat16),
        grid=(mp // tm,),
        in_specs=[_row_spec(tm, coutp), _vec_spec(coutp), _vec_spec(coutp),
                  _row_spec(tm, coutp), _vec_spec(coutp), _vec_spec(coutp)],
        out_specs=_row_spec(tm, coutp),
        compiler_params=_cparams(("parallel",)),
    )(y2, sc2, sh2, res, scr, shr)


# ------------------------- JAX glue (im2col, padding, weight repack) ----------

def _round_up(v, m):
    return ((v + m - 1) // m) * m


def _pad2(a, rows, cols):
    r, c = a.shape
    return jnp.pad(a, ((0, rows - r), (0, cols - c)))


def _pad_row(v, cols):
    return jnp.pad(v.astype(jnp.float32), (0, cols - v.shape[0])).reshape(1, cols)


def _im2col3x3(x_nhwc, stride):
    """3x3 conv, padding=1. Returns (N*Ho*Wo, 9*C) tap-major and (Ho, Wo)."""
    xp = jnp.pad(x_nhwc, ((0, 0), (1, 1), (1, 1), (0, 0)))
    n, hp, wp, c = xp.shape
    ho = (hp - 3) // stride + 1
    wo = (wp - 3) // stride + 1
    taps = []
    for kh in range(3):
        for kw in range(3):
            taps.append(xp[:, kh:kh + (ho - 1) * stride + 1:stride,
                            kw:kw + (wo - 1) * stride + 1:stride, :])
    col = jnp.concatenate(taps, axis=-1)          # (N, Ho, Wo, 9*C)
    return col.reshape(n * ho * wo, 9 * c), (ho, wo)


def _w3x3_to_col(w):
    """(Cout, Cin, 3, 3) -> (9*Cin, Cout), tap-major (matches _im2col3x3)."""
    return jnp.concatenate(
        [w[:, :, kh, kw].T for kh in range(3) for kw in range(3)], axis=0)


def _bn_scale_shift(stats2, g, b, m_true):
    """Fold batch stats + gamma/beta into (1, Coutp) scale/shift (once per BN)."""
    inv = 1.0 / float(m_true)
    mean = stats2[0:1, :] * inv
    var = jnp.maximum(stats2[1:2, :] * inv - mean * mean, 0.0)   # biased var
    scale = g * lax.rsqrt(var + EPS)
    shift = b - mean * scale
    return scale, shift


# ------------------------- BasicBlock forward -------------------------

def basic_block_forward(x, params, stride=1, downsample=False, tile_m=None):
    n, cin, h, w = x.shape
    cout = params["w1"].shape[0]
    coutp = _round_up(cout, LANE)
    if not downsample and (stride != 1 or cin != cout):
        raise ValueError("identity shortcut requires stride==1 and cin==cout; "
                         "use downsample=True otherwise")

    xh = jnp.transpose(x, (0, 2, 3, 1))                       # NCHW -> NHWC
    xh_bf = xh.astype(jnp.bfloat16)                           # bf16 MXU operands

    # ---- conv1: matmul + batch stats (pass 1, sharded "parallel" x "arbitrary")
    x1col, (ho, wo) = _im2col3x3(xh_bf, stride)
    m = n * ho * wo
    tm = tile_m if tile_m is not None else _DEFAULT_TILE_M
    tm = min(tm, _round_up(m, 16))
    mp = _round_up(m, tm)
    k1p = _round_up(9 * cin, KPAD)
    x1p = _pad2(x1col, mp, k1p)
    w1p = _pad2(_w3x3_to_col(params["w1"]).astype(jnp.bfloat16), k1p, coutp)
    y1raw, stats1 = _matmul_stats(x1p, w1p, tm)               # bf16, (2, coutp)

    # ---- bn1+ReLU apply: folded scale/shift, bf16 in / bf16 out (pass 2) ----
    g1, b1 = _pad_row(params["g1"], coutp), _pad_row(params["b1"], coutp)
    sc1, sh1 = _bn_scale_shift(stats1, g1, b1, m)
    y1 = _scale_shift_relu(y1raw, sc1, sh1, tm)               # bf16 (mp, coutp)

    # ---- conv2 (+ optional fused 1x1 downsample projection) + stats ----
    y1_sp = y1[:m, :cout].reshape(n, ho, wo, cout)            # bf16 NHWC
    x2col, _ = _im2col3x3(y1_sp, 1)
    k2p = _round_up(9 * cout, KPAD)
    x2p = _pad2(x2col, mp, k2p)
    w2p = _pad2(_w3x3_to_col(params["w2"]).astype(jnp.bfloat16), k2p, coutp)
    g2, b2 = _pad_row(params["g2"], coutp), _pad_row(params["b2"], coutp)

    if downsample:
        kdp = _round_up(cin, KPAD)
        xd = xh_bf[:, ::stride, ::stride, :].reshape(m, cin)  # 1x1 conv, stride s
        xdp = _pad2(xd, mp, kdp)
        wdp = _pad2(params["w_ds"][:, :, 0, 0].T.astype(jnp.bfloat16), kdp, coutp)
        gd, bd = _pad_row(params["g_ds"], coutp), _pad_row(params["b_ds"], coutp)
        y2raw, ydraw, stats2, statsd = _dual_matmul_stats(x2p, w2p, xdp, wdp, tm)
        sc2, sh2 = _bn_scale_shift(stats2, g2, b2, m)
        scr, shr = _bn_scale_shift(statsd, gd, bd, m)
        res = ydraw                                           # bf16
    else:
        y2raw, stats2 = _matmul_stats(x2p, w2p, tm)
        sc2, sh2 = _bn_scale_shift(stats2, g2, b2, m)
        res = _pad2(xh_bf.reshape(m, cin), mp, coutp)         # bf16 identity
        scr = _pad_row(jnp.ones((cout,), jnp.float32), coutp)
        shr = jnp.zeros((1, coutp), jnp.float32)

    out = _tail(y2raw, sc2, sh2, res, scr, shr, tm)           # bf16 (mp, coutp)

    out = out[:m, :cout].reshape(n, ho, wo, cout).astype(jnp.float32)
    return jnp.transpose(out, (0, 3, 1, 2))                   # NHWC -> NCHW


# ------------------------- Pure-JAX reference (f32, for checking) -------------

def _ref_forward(x, params, stride, downsample):
    def conv(a, w, s, p):
        return lax.conv_general_dilated(
            a, w, (s, s), [(p, p), (p, p)],
            dimension_numbers=("NCHW", "OIHW", "NCHW"))

    def bn(y, g, b):
        mean = jnp.mean(y, axis=(0, 2, 3), keepdims=True)
        var = jnp.mean(jnp.square(y - mean), axis=(0, 2, 3), keepdims=True)
        return (y - mean) * lax.rsqrt(var + EPS) * g.reshape(1, -1, 1, 1) \
            + b.reshape(1, -1, 1, 1)

    i = x
    y = jnp.maximum(bn(conv(x, params["w1"], stride, 1), params["g1"], params["b1"]), 0.0)
    y = bn(conv(y, params["w2"], 1, 1), params["g2"], params["b2"])
    if downsample:
        i = bn(conv(x, params["w_ds"], stride, 0), params["g_ds"], params["b_ds"])
    return jnp.maximum(y + i, 0.0)


# ------------------------- deterministic parameter init -------------------------

def _init_params(key, cin, cout, downsample):
    keys = jax.random.split(key, 9)
    p = {
        "w1": 0.1 * jax.random.normal(keys[0], (cout, cin, 3, 3), jnp.float32),
        "g1": 1.0 + 0.1 * jax.random.normal(keys[1], (cout,), jnp.float32),
        "b1": 0.1 * jax.random.normal(keys[2], (cout,), jnp.float32),
        "w2": 0.1 * jax.random.normal(keys[3], (cout, cout, 3, 3), jnp.float32),
        "g2": 1.0 + 0.1 * jax.random.normal(keys[4], (cout,), jnp.float32),
        "b2": 0.1 * jax.random.normal(keys[5], (cout,), jnp.float32),
    }
    if downsample:
        p["w_ds"] = 0.1 * jax.random.normal(keys[6], (cout, cin, 1, 1), jnp.float32)
        p["g_ds"] = 1.0 + 0.05 * jax.random.normal(keys[7], (cout,), jnp.float32)
        p["b_ds"] = 0.05 * jax.random.normal(keys[8], (cout,), jnp.float32)
    return p


if __name__ == "__main__":
    key = jax.random.PRNGKey(0)
    kx, kp1, kp2 = jax.random.split(key, 3)
    fwd = jax.jit(basic_block_forward,
                  static_argnames=("stride", "downsample", "tile_m"))

    x = jax.random.normal(kx, (2, 4, 16, 16), jnp.float32)

    # bf16 MXU operands + bf16 (M, Cout) intermediates / residual / output vs.
    # the f32 reference need a loose tolerance; BN statistics, matmul
    # accumulation and the folded scale/shift math all stay f32.
    TOL = dict(rtol=3e-2, atol=3e-2)

    # tile_m=64 so this tiny test exercises multi-tile BN-stat accumulation AND
    # the 2-shard "parallel" core split + per-shard stats reduction; production
    # uses the per-generation default tile (512 on v7x, 1024 on v5e/v6e).
    # Config A: downsampling block (in=4 -> out=8, stride=2, 1x1 projection)
    params_a = _init_params(kp1, 4, 8, downsample=True)
    out_a = jax.block_until_ready(
        fwd(x, params_a, stride=2, downsample=True, tile_m=64))
    ref_a = jax.block_until_ready(_ref_forward(x, params_a, 2, True))
    np.testing.assert_allclose(np.asarray(out_a), np.asarray(ref_a), **TOL)
    assert out_a.shape == (2, 8, 8, 8)

    # Config B: identity-shortcut block (in=out=4, stride=1), M=512 -> 8 tiles
    params_b = _init_params(kp2, 4, 4, downsample=False)
    out_b = jax.block_until_ready(
        fwd(x, params_b, stride=1, downsample=False, tile_m=64))
    ref_b = jax.block_until_ready(_ref_forward(x, params_b, 1, False))
    np.testing.assert_allclose(np.asarray(out_b), np.asarray(ref_b), **TOL)
    assert out_b.shape == (2, 4, 16, 16)

    print("KERNEL_OK")
</pallas_src>

<mosaic_0001>
module attributes {stable_mosaic.version = 11 : i64} {
  func.func @scale_shift_relu_kernel(%arg0: i32, %arg1: memref<64x128xbf16, #tpu.memory_space<vmem>>, %arg2: memref<1x128xf32, #tpu.memory_space<vmem>>, %arg3: memref<1x128xf32, #tpu.memory_space<vmem>>, %arg4: memref<64x128xbf16, #tpu.memory_space<vmem>>) attributes {dimension_semantics = [#tpu.dimension_semantics<parallel>], iteration_bounds = array<i64: 2>, scalar_prefetch = 0 : i64, scratch_operands = 0 : i64, tpu.core_type = #tpu.core_type<tc>, window_params = [{transform_indices = @transform_0, window_bounds = array<i64: 64, 128>}, {pipeline_mode = #tpu.pipeline_mode<synchronous>, transform_indices = @transform_1, window_bounds = array<i64: 1, 128>}, {pipeline_mode = #tpu.pipeline_mode<synchronous>, transform_indices = @transform_2, window_bounds = array<i64: 1, 128>}, {transform_indices = @transform_3, window_bounds = array<i64: 64, 128>}]} {
    %c0 = arith.constant 0 : index
    %c0_0 = arith.constant 0 : index
    %0 = vector.load %arg1[%c0, %c0_0] : memref<64x128xbf16, #tpu.memory_space<vmem>>, vector<64x128xbf16>
    %1 = arith.extf %0 : vector<64x128xbf16> to vector<64x128xf32>
    %c0_1 = arith.constant 0 : index
    %c0_2 = arith.constant 0 : index
    %2 = vector.load %arg2[%c0_1, %c0_2] : memref<1x128xf32, #tpu.memory_space<vmem>>, vector<1x128xf32>
    %3 = vector.broadcast %2 : vector<1x128xf32> to vector<64x128xf32>
    %4 = arith.mulf %1, %3 : vector<64x128xf32>
    %c0_3 = arith.constant 0 : index
    %c0_4 = arith.constant 0 : index
    %5 = vector.load %arg3[%c0_3, %c0_4] : memref<1x128xf32, #tpu.memory_space<vmem>>, vector<1x128xf32>
    %6 = vector.broadcast %5 : vector<1x128xf32> to vector<64x128xf32>
    %7 = arith.addf %4, %6 : vector<64x128xf32>
    %cst = arith.constant 0.000000e+00 : f32
    %8 = vector.broadcast %cst : f32 to vector<64x128xf32>
    %9 = arith.maximumf %7, %8 : vector<64x128xf32>
    %10 = arith.truncf %9 : vector<64x128xf32> to vector<64x128xbf16>
    %c0_5 = arith.constant 0 : index
    %c0_6 = arith.constant 0 : index
    %11 = vector.load %arg4[%c0_5, %c0_6] : memref<64x128xbf16, #tpu.memory_space<vmem>>, vector<64x128xbf16>
    tpu.vector_store %arg4[%c0_5, %c0_6], %10 {strides = array<i32>} : memref<64x128xbf16, #tpu.memory_space<vmem>>, vector<64x128xbf16>,
    return
  }
  func.func @transform_0(%arg0: i32) -> (i32, i32) {
    %c0_i32 = arith.constant 0 : i32
    %c0_i32_0 = arith.constant 0 : i32
    return %arg0, %c0_i32 : i32, i32
  }
  func.func @transform_1(%arg0: i32) -> (i32, i32) {
    %c0_i32 = arith.constant 0 : i32
    %c0_i32_0 = arith.constant 0 : i32
    %c0_i32_1 = arith.constant 0 : i32
    return %c0_i32, %c0_i32_0 : i32, i32
  }
  func.func @transform_2(%arg0: i32) -> (i32, i32) {
    %c0_i32 = arith.constant 0 : i32
    %c0_i32_0 = arith.constant 0 : i32
    %c0_i32_1 = arith.constant 0 : i32
    return %c0_i32, %c0_i32_0 : i32, i32
  }
  func.func @transform_3(%arg0: i32) -> (i32, i32) {
    %c0_i32 = arith.constant 0 : i32
    %c0_i32_0 = arith.constant 0 : i32
    return %arg0, %c0_i32 : i32, i32
  }
}

module attributes {stable_mosaic.version = 11 : i64} {
  func.func @matmul_stats_kernel(%arg0: i32, %arg1: i32, %arg2: memref<64x48xbf16, #tpu.memory_space<vmem>>, %arg3: memref<48x128xbf16, #tpu.memory_space<vmem>>, %arg4: memref<64x128xbf16, #tpu.memory_space<vmem>>, %arg5: memref<8x128xf32, #tpu.memory_space<vmem>>) attributes {dimension_semantics = [#tpu.dimension_semantics<parallel>, #tpu.dimension_semantics<arbitrary>], iteration_bounds = array<i64: 2, 1>, scalar_prefetch = 0 : i64, scratch_operands = 0 : i64, tpu.core_type = #tpu.core_type<tc>, window_params = [{transform_indices = @transform_0, window_bounds = array<i64: 64, 48>}, {pipeline_mode = #tpu.pipeline_mode<synchronous>, transform_indices = @transform_1, window_bounds = array<i64: 48, 128>}, {transform_indices = @transform_2, window_bounds = array<i64: 64, 128>}, {transform_indices = @transform_3, window_bounds = array<i64: 8, 128>}]} {
    %c0_i32 = arith.constant 0 : i32
    %0 = arith.cmpi eq, %arg1, %c0_i32 : i32
    %1 = arith.extui %0 : i1 to i32
    %c0_i32_0 = arith.constant 0 : i32
    %2 = arith.cmpi ne, %1, %c0_i32_0 : i32
    scf.if %2 {
      %cst_15 = arith.constant 0.000000e+00 : f32
      %19 = vector.broadcast %cst_15 : f32 to vector<8x128xf32>
      %c0_16 = arith.constant 0 : index
      %c0_17 = arith.constant 0 : index
      %20 = vector.load %arg5[%c0_16, %c0_17] : memref<8x128xf32, #tpu.memory_space<vmem>>, vector<8x128xf32>
      tpu.vector_store %arg5[%c0_16, %c0_17], %19 {strides = array<i32>} : memref<8x128xf32, #tpu.memory_space<vmem>>, vector<8x128xf32>,
    } else {
    }
    %c0 = arith.constant 0 : index
    %c0_1 = arith.constant 0 : index
    %3 = vector.load %arg2[%c0, %c0_1] : memref<64x48xbf16, #tpu.memory_space<vmem>>, vector<64x48xbf16>
    %c0_2 = arith.constant 0 : index
    %c0_3 = arith.constant 0 : index
    %4 = vector.load %arg3[%c0_2, %c0_3] : memref<48x128xbf16, #tpu.memory_space<vmem>>, vector<48x128xbf16>
    %cst = arith.constant dense<0.000000e+00> : vector<64x128xf32>
    %5 = tpu.matmul %3, %4, %cst {dimension_numbers = #tpu.dot_dimension_numbers<[1], [0], [0], [1], [0, 0, 1, 1], [], []>} : vector<64x48xbf16>, vector<48x128xbf16>, vector<64x128xf32> -> vector<64x128xf32>
    %6 = arith.truncf %5 : vector<64x128xf32> to vector<64x128xbf16>
    %c0_4 = arith.constant 0 : index
    %c0_5 = arith.constant 0 : index
    %7 = vector.load %arg4[%c0_4, %c0_5] : memref<64x128xbf16, #tpu.memory_space<vmem>>, vector<64x128xbf16>
    tpu.vector_store %arg4[%c0_4, %c0_5], %6 {strides = array<i32>} : memref<64x128xbf16, #tpu.memory_space<vmem>>, vector<64x128xbf16>,
    %c0_6 = arith.constant 0 : index
    %c0_7 = arith.constant 0 : index
    %8 = vector.load %arg5[%c0_6, %c0_7] : memref<8x128xf32, #tpu.memory_space<vmem>>, vector<1x128xf32>
    %cst_8 = arith.constant dense<0.000000e+00> : vector<128xf32>
    %9 = vector.multi_reduction <add>, %5, %cst_8 [0] : vector<64x128xf32> to vector<128xf32>
    %10 = vector.shape_cast %9 : vector<128xf32> to vector<1x128xf32>
    %11 = arith.addf %8, %10 : vector<1x128xf32>
    %c0_9 = arith.constant 0 : index
    %c0_10 = arith.constant 0 : index
    %12 = vector.load %arg5[%c0_9, %c0_10] : memref<8x128xf32, #tpu.memory_space<vmem>>, vector<1x128xf32>
    tpu.vector_store %arg5[%c0_9, %c0_10], %11 {strides = array<i32>} : memref<8x128xf32, #tpu.memory_space<vmem>>, vector<1x128xf32>,
    %c1 = arith.constant 1 : index
    %c0_11 = arith.constant 0 : index
    %13 = vector.load %arg5[%c1, %c0_11] : memref<8x128xf32, #tpu.memory_space<vmem>>, vector<1x128xf32>
    %14 = arith.mulf %5, %5 : vector<64x128xf32>
    %cst_12 = arith.constant dense<0.000000e+00> : vector<128xf32>
    %15 = vector.multi_reduction <add>, %14, %cst_12 [0] : vector<64x128xf32> to vector<128xf32>
    %16 = vector.shape_cast %15 : vector<128xf32> to vector<1x128xf32>
    %17 = arith.addf %13, %16 : vector<1x128xf32>
    %c1_13 = arith.constant 1 : index
    %c0_14 = arith.constant 0 : index
    %18 = vector.load %arg5[%c1_13, %c0_14] : memref<8x128xf32, #tpu.memory_space<vmem>>, vector<1x128xf32>
    tpu.vector_store %arg5[%c1_13, %c0_14], %17 {strides = array<i32>} : memref<8x128xf32, #tpu.memory_space<vmem>>, vector<1x128xf32>,
    return
  }
  func.func @transform_0(%arg0: i32, %arg1: i32) -> (i32, i32) {
    %c1_i32 = arith.constant 1 : i32
    %0 = arith.muli %arg0, %c1_i32 : i32
    %1 = arith.addi %0, %arg1 : i32
    %c0_i32 = arith.constant 0 : i32
    %c0_i32_0 = arith.constant 0 : i32
    return %1, %c0_i32 : i32, i32
  }
  func.func @transform_1(%arg0: i32, %arg1: i32) -> (i32, i32) {
    %c0_i32 = arith.constant 0 : i32
    %c0_i32_0 = arith.constant 0 : i32
    %c0_i32_1 = arith.constant 0 : i32
    return %c0_i32, %c0_i32_0 : i32, i32
  }
  func.func @transform_2(%arg0: i32, %arg1: i32) -> (i32, i32) {
    %c1_i32 = arith.constant 1 : i32
    %0 = arith.muli %arg0, %c1_i32 : i32
    %1 = arith.addi %0, %arg1 : i32
    %c0_i32 = arith.constant 0 : i32
    %c0_i32_0 = arith.constant 0 : i32
    return %1, %c0_i32 : i32, i32
  }
  func.func @transform_3(%arg0: i32, %arg1: i32) -> (i32, i32) {
    %c0_i32 = arith.constant 0 : i32
    %c0_i32_0 = arith.constant 0 : i32
    return %arg0, %c0_i32 : i32, i32
  }
}

module attributes {stable_mosaic.version = 11 : i64} {
  func.func @dual_matmul_stats_kernel(%arg0: i32, %arg1: i32, %arg2: memref<64x80xbf16, #tpu.memory_space<vmem>>, %arg3: memref<80x128xbf16, #tpu.memory_space<vmem>>, %arg4: memref<64x16xbf16, #tpu.memory_space<vmem>>, %arg5: memref<16x128xbf16, #tpu.memory_space<vmem>>, %arg6: memref<64x128xbf16, #tpu.memory_space<vmem>>, %arg7: memref<64x128xbf16, #tpu.memory_space<vmem>>, %arg8: memref<8x128xf32, #tpu.memory_space<vmem>>, %arg9: memref<8x128xf32, #tpu.memory_space<vmem>>) attributes {dimension_semantics = [#tpu.dimension_semantics<parallel>, #tpu.dimension_semantics<arbitrary>], iteration_bounds = array<i64: 2, 1>, scalar_prefetch = 0 : i64, scratch_operands = 0 : i64, tpu.core_type = #tpu.core_type<tc>, window_params = [{transform_indices = @transform_0, window_bounds = array<i64: 64, 80>}, {pipeline_mode = #tpu.pipeline_mode<synchronous>, transform_indices = @transform_1, window_bounds = array<i64: 80, 128>}, {transform_indices = @transform_2, window_bounds = array<i64: 64, 16>}, {pipeline_mode = #tpu.pipeline_mode<synchronous>, transform_indices = @transform_3, window_bounds = array<i64: 16, 128>}, {transform_indices = @transform_4, window_bounds = array<i64: 64, 128>}, {transform_indices = @transform_5, window_bounds = array<i64: 64, 128>}, {transform_indices = @transform_6, window_bounds = array<i64: 8, 128>}, {transform_indices = @transform_7, window_bounds = array<i64: 8, 128>}]} {
    %c0_i32 = arith.constant 0 : i32
    %0 = arith.cmpi eq, %arg1, %c0_i32 : i32
    %1 = arith.extui %0 : i1 to i32
    %c0_i32_0 = arith.constant 0 : i32
    %2 = arith.cmpi ne, %1, %c0_i32_0 : i32
    scf.if %2 {
      %cst_32 = arith.constant 0.000000e+00 : f32
      %35 = vector.broadcast %cst_32 : f32 to vector<8x128xf32>
      %c0_33 = arith.constant 0 : index
      %c0_34 = arith.constant 0 : index
      %36 = vector.load %arg8[%c0_33, %c0_34] : memref<8x128xf32, #tpu.memory_space<vmem>>, vector<8x128xf32>
      tpu.vector_store %arg8[%c0_33, %c0_34], %35 {strides = array<i32>} : memref<8x128xf32, #tpu.memory_space<vmem>>, vector<8x128xf32>,
      %cst_35 = arith.constant 0.000000e+00 : f32
      %37 = vector.broadcast %cst_35 : f32 to vector<8x128xf32>
      %c0_36 = arith.constant 0 : index
      %c0_37 = arith.constant 0 : index
      %38 = vector.load %arg9[%c0_36, %c0_37] : memref<8x128xf32, #tpu.memory_space<vmem>>, vector<8x128xf32>
      tpu.vector_store %arg9[%c0_36, %c0_37], %37 {strides = array<i32>} : memref<8x128xf32, #tpu.memory_space<vmem>>, vector<8x128xf32>,
    } else {
    }
    %c0 = arith.constant 0 : index
    %c0_1 = arith.constant 0 : index
    %3 = vector.load %arg2[%c0, %c0_1] : memref<64x80xbf16, #tpu.memory_space<vmem>>, vector<64x80xbf16>
    %c0_2 = arith.constant 0 : index
    %c0_3 = arith.constant 0 : index
    %4 = vector.load %arg3[%c0_2, %c0_3] : memref<80x128xbf16, #tpu.memory_space<vmem>>, vector<80x128xbf16>
    %cst = arith.constant dense<0.000000e+00> : vector<64x128xf32>
    %5 = tpu.matmul %3, %4, %cst {dimension_numbers = #tpu.dot_dimension_numbers<[1], [0], [0], [1], [0, 0, 1, 1], [], []>} : vector<64x80xbf16>, vector<80x128xbf16>, vector<64x128xf32> -> vector<64x128xf32>
    %c0_4 = arith.constant 0 : index
    %c0_5 = arith.constant 0 : index
    %6 = vector.load %arg4[%c0_4, %c0_5] : memref<64x16xbf16, #tpu.memory_space<vmem>>, vector<64x16xbf16>
    %c0_6 = arith.constant 0 : index
    %c0_7 = arith.constant 0 : index
    %7 = vector.load %arg5[%c0_6, %c0_7] : memref<16x128xbf16, #tpu.memory_space<vmem>>, vector<16x128xbf16>
    %cst_8 = arith.constant dense<0.000000e+00> : vector<64x128xf32>
    %8 = tpu.matmul %6, %7, %cst_8 {dimension_numbers = #tpu.dot_dimension_numbers<[1], [0], [0], [1], [0, 0, 1, 1], [], []>} : vector<64x16xbf16>, vector<16x128xbf16>, vector<64x128xf32> -> vector<64x128xf32>
    %9 = arith.truncf %5 : vector<64x128xf32> to vector<64x128xbf16>
    %c0_9 = arith.constant 0 : index
    %c0_10 = arith.constant 0 : index
    %10 = vector.load %arg6[%c0_9, %c0_10] : memref<64x128xbf16, #tpu.memory_space<vmem>>, vector<64x128xbf16>
    tpu.vector_store %arg6[%c0_9, %c0_10], %9 {strides = array<i32>} : memref<64x128xbf16, #tpu.memory_space<vmem>>, vector<64x128xbf16>,
    %11 = arith.truncf %8 : vector<64x128xf32> to vector<64x128xbf16>
    %c0_11 = arith.constant 0 : index
    %c0_12 = arith.constant 0 : index
    %12 = vector.load %arg7[%c0_11, %c0_12] : memref<64x128xbf16, #tpu.memory_space<vmem>>, vector<64x128xbf16>
    tpu.vector_store %arg7[%c0_11, %c0_12], %11 {strides = array<i32>} : memref<64x128xbf16, #tpu.memory_space<vmem>>, vector<64x128xbf16>,
    %c0_13 = arith.constant 0 : index
    %c0_14 = arith.constant 0 : index
    %13 = vector.load %arg8[%c0_13, %c0_14] : memref<8x128xf32, #tpu.memory_space<vmem>>, vector<1x128xf32>
    %cst_15 = arith.constant dense<0.000000e+00> : vector<128xf32>
    %14 = vector.multi_reduction <add>, %5, %cst_15 [0] : vector<64x128xf32> to vector<128xf32>
    %15 = vector.shape_cast %14 : vector<128xf32> to vector<1x128xf32>
    %16 = arith.addf %13, %15 : vector<1x128xf32>
    %c0_16 = arith.constant 0 : index
    %c0_17 = arith.constant 0 : index
    %17 = vector.load %arg8[%c0_16, %c0_17] : memref<8x128xf32, #tpu.memory_space<vmem>>, vector<1x128xf32>
    tpu.vector_store %arg8[%c0_16, %c0_17], %16 {strides = array<i32>} : memref<8x128xf32, #tpu.memory_space<vmem>>, vector<1x128xf32>,
    %c1 = arith.constant 1 : index
    %c0_18 = arith.constant 0 : index
    %18 = vector.load %arg8[%c1, %c0_18] : memref<8x128xf32, #tpu.memory_space<vmem>>, vector<1x128xf32>
    %19 = arith.mulf %5, %5 : vector<64x128xf32>
    %cst_19 = arith.constant dense<0.000000e+00> : vector<128xf32>
    %20 = vector.multi_reduction <add>, %19, %cst_19 [0] : vector<64x128xf32> to vector<128xf32>
    %21 = vector.shape_cast %20 : vector<128xf32> to vector<1x128xf32>
    %22 = arith.addf %18, %21 : vector<1x128xf32>
    %c1_20 = arith.constant 1 : index
    %c0_21 = arith.constant 0 : index
    %23 = vector.load %arg8[%c1_20, %c0_21] : memref<8x128xf32, #tpu.memory_space<vmem>>, vector<1x128xf32>
    tpu.vector_store %arg8[%c1_20, %c0_21], %22 {strides = array<i32>} : memref<8x128xf32, #tpu.memory_space<vmem>>, vector<1x128xf32>,
    %c0_22 = arith.constant 0 : index
    %c0_23 = arith.constant 0 : index
    %24 = vector.load %arg9[%c0_22, %c0_23] : memref<8x128xf32, #tpu.memory_space<vmem>>, vector<1x128xf32>
    %cst_24 = arith.constant dense<0.000000e+00> : vector<128xf32>
    %25 = vector.multi_reduction <add>, %8, %cst_24 [0] : vector<64x128xf32> to vector<128xf32>
    %26 = vector.shape_cast %25 : vector<128xf32> to vector<1x128xf32>
    %27 = arith.addf %24, %26 : vector<1x128xf32>
    %c0_25 = arith.constant 0 : index
    %c0_26 = arith.constant 0 : index
    %28 = vector.load %arg9[%c0_25, %c0_26] : memref<8x128xf32, #tpu.memory_space<vmem>>, vector<1x128xf32>
    tpu.vector_store %arg9[%c0_25, %c0_26], %27 {strides = array<i32>} : memref<8x128xf32, #tpu.memory_space<vmem>>, vector<1x128xf32>,
    %c1_27 = arith.constant 1 : index
    %c0_28 = arith.constant 0 : index
    %29 = vector.load %arg9[%c1_27, %c0_28] : memref<8x128xf32, #tpu.memory_space<vmem>>, vector<1x128xf32>
    %30 = arith.mulf %8, %8 : vector<64x128xf32>
    %cst_29 = arith.constant dense<0.000000e+00> : vector<128xf32>
    %31 = vector.multi_reduction <add>, %30, %cst_29 [0] : vector<64x128xf32> to vector<128xf32>
    %32 = vector.shape_cast %31 : vector<128xf32> to vector<1x128xf32>
    %33 = arith.addf %29, %32 : vector<1x128xf32>
    %c1_30 = arith.constant 1 : index
    %c0_31 = arith.constant 0 : index
    %34 = vector.load %arg9[%c1_30, %c0_31] : memref<8x128xf32, #tpu.memory_space<vmem>>, vector<1x128xf32>
    tpu.vector_store %arg9[%c1_30, %c0_31], %33 {strides = array<i32>} : memref<8x128xf32, #tpu.memory_space<vmem>>, vector<1x128xf32>,
    return
  }
  func.func @transform_0(%arg0: i32, %arg1: i32) -> (i32, i32) {
    %c1_i32 = arith.constant 1 : i32
    %0 = arith.muli %arg0, %c1_i32 : i32
    %1 = arith.addi %0, %arg1 : i32
    %c0_i32 = arith.constant 0 : i32
    %c0_i32_0 = arith.constant 0 : i32
    return %1, %c0_i32 : i32, i32
  }
  func.func @transform_1(%arg0: i32, %arg1: i32) -> (i32, i32) {
    %c0_i32 = arith.constant 0 : i32
    %c0_i32_0 = arith.constant 0 : i32
    %c0_i32_1 = arith.constant 0 : i32
    return %c0_i32, %c0_i32_0 : i32, i32
  }
  func.func @transform_2(%arg0: i32, %arg1: i32) -> (i32, i32) {
    %c1_i32 = arith.constant 1 : i32
    %0 = arith.muli %arg0, %c1_i32 : i32
    %1 = arith.addi %0, %arg1 : i32
    %c0_i32 = arith.constant 0 : i32
    %c0_i32_0 = arith.constant 0 : i32
    return %1, %c0_i32 : i32, i32
  }
  func.func @transform_3(%arg0: i32, %arg1: i32) -> (i32, i32) {
    %c0_i32 = arith.constant 0 : i32
    %c0_i32_0 = arith.constant 0 : i32
    %c0_i32_1 = arith.constant 0 : i32
    return %c0_i32, %c0_i32_0 : i32, i32
  }
  func.func @transform_4(%arg0: i32, %arg1: i32) -> (i32, i32) {
    %c1_i32 = arith.constant 1 : i32
    %0 = arith.muli %arg0, %c1_i32 : i32
    %1 = arith.addi %0, %arg1 : i32
    %c0_i32 = arith.constant 0 : i32
    %c0_i32_0 = arith.constant 0 : i32
    return %1, %c0_i32 : i32, i32
  }
  func.func @transform_5(%arg0: i32, %arg1: i32) -> (i32, i32) {
    %c1_i32 = arith.constant 1 : i32
    %0 = arith.muli %arg0, %c1_i32 : i32
    %1 = arith.addi %0, %arg1 : i32
    %c0_i32 = arith.constant 0 : i32
    %c0_i32_0 = arith.constant 0 : i32
    return %1, %c0_i32 : i32, i32
  }
  func.func @transform_6(%arg0: i32, %arg1: i32) -> (i32, i32) {
    %c0_i32 = arith.constant 0 : i32
    %c0_i32_0 = arith.constant 0 : i32
    return %arg0, %c0_i32 : i32, i32
  }
  func.func @transform_7(%arg0: i32, %arg1: i32) -> (i32, i32) {
    %c0_i32 = arith.constant 0 : i32
    %c0_i32_0 = arith.constant 0 : i32
    return %arg0, %c0_i32 : i32, i32
  }
}

module attributes {stable_mosaic.version = 11 : i64} {
  func.func @tail_kernel(%arg0: i32, %arg1: memref<64x128xbf16, #tpu.memory_space<vmem>>, %arg2: memref<1x128xf32, #tpu.memory_space<vmem>>, %arg3: memref<1x128xf32, #tpu.memory_space<vmem>>, %arg4: memref<64x128xbf16, #tpu.memory_space<vmem>>, %arg5: memref<1x128xf32, #tpu.memory_space<vmem>>, %arg6: memref<1x128xf32, #tpu.memory_space<vmem>>, %arg7: memref<64x128xbf16, #tpu.memory_space<vmem>>) attributes {dimension_semantics = [#tpu.dimension_semantics<parallel>], iteration_bounds = array<i64: 2>, scalar_prefetch = 0 : i64, scratch_operands = 0 : i64, tpu.core_type = #tpu.core_type<tc>, window_params = [{transform_indices = @transform_0, window_bounds = array<i64: 64, 128>}, {pipeline_mode = #tpu.pipeline_mode<synchronous>, transform_indices = @transform_1, window_bounds = array<i64: 1, 128>}, {pipeline_mode = #tpu.pipeline_mode<synchronous>, transform_indices = @transform_2, window_bounds = array<i64: 1, 128>}, {transform_indices = @transform_3, window_bounds = array<i64: 64, 128>}, {pipeline_mode = #tpu.pipeline_mode<synchronous>, transform_indices = @transform_4, window_bounds = array<i64: 1, 128>}, {pipeline_mode = #tpu.pipeline_mode<synchronous>, transform_indices = @transform_5, window_bounds = array<i64: 1, 128>}, {transform_indices = @transform_6, window_bounds = array<i64: 64, 128>}]} {
    %c0 = arith.constant 0 : index
    %c0_0 = arith.constant 0 : index
    %0 = vector.load %arg1[%c0, %c0_0] : memref<64x128xbf16, #tpu.memory_space<vmem>>, vector<64x128xbf16>
    %1 = arith.extf %0 : vector<64x128xbf16> to vector<64x128xf32>
    %c0_1 = arith.constant 0 : index
    %c0_2 = arith.constant 0 : index
    %2 = vector.load %arg4[%c0_1, %c0_2] : memref<64x128xbf16, #tpu.memory_space<vmem>>, vector<64x128xbf16>
    %3 = arith.extf %2 : vector<64x128xbf16> to vector<64x128xf32>
    %c0_3 = arith.constant 0 : index
    %c0_4 = arith.constant 0 : index
    %4 = vector.load %arg2[%c0_3, %c0_4] : memref<1x128xf32, #tpu.memory_space<vmem>>, vector<1x128xf32>
    %5 = vector.broadcast %4 : vector<1x128xf32> to vector<64x128xf32>
    %6 = arith.mulf %1, %5 : vector<64x128xf32>
    %c0_5 = arith.constant 0 : index
    %c0_6 = arith.constant 0 : index
    %7 = vector.load %arg3[%c0_5, %c0_6] : memref<1x128xf32, #tpu.memory_space<vmem>>, vector<1x128xf32>
    %8 = vector.broadcast %7 : vector<1x128xf32> to vector<64x128xf32>
    %9 = arith.addf %6, %8 : vector<64x128xf32>
    %c0_7 = arith.constant 0 : index
    %c0_8 = arith.constant 0 : index
    %10 = vector.load %arg5[%c0_7, %c0_8] : memref<1x128xf32, #tpu.memory_space<vmem>>, vector<1x128xf32>
    %11 = vector.broadcast %10 : vector<1x128xf32> to vector<64x128xf32>
    %12 = arith.mulf %3, %11 : vector<64x128xf32>
    %13 = arith.addf %9, %12 : vector<64x128xf32>
    %c0_9 = arith.constant 0 : index
    %c0_10 = arith.constant 0 : index
    %14 = vector.load %arg6[%c0_9, %c0_10] : memref<1x128xf32, #tpu.memory_space<vmem>>, vector<1x128xf32>
    %15 = vector.broadcast %14 : vector<1x128xf32> to vector<64x128xf32>
    %16 = arith.addf %13, %15 : vector<64x128xf32>
    %cst = arith.constant 0.000000e+00 : f32
    %17 = vector.broadcast %cst : f32 to vector<64x128xf32>
    %18 = arith.maximumf %16, %17 : vector<64x128xf32>
    %19 = arith.truncf %18 : vector<64x128xf32> to vector<64x128xbf16>
    %c0_11 = arith.constant 0 : index
    %c0_12 = arith.constant 0 : index
    %20 = vector.load %arg7[%c0_11, %c0_12] : memref<64x128xbf16, #tpu.memory_space<vmem>>, vector<64x128xbf16>
    tpu.vector_store %arg7[%c0_11, %c0_12], %19 {strides = array<i32>} : memref<64x128xbf16, #tpu.memory_space<vmem>>, vector<64x128xbf16>,
    return
  }
  func.func @transform_0(%arg0: i32) -> (i32, i32) {
    %c0_i32 = arith.constant 0 : i32
    %c0_i32_0 = arith.constant 0 : i32
    return %arg0, %c0_i32 : i32, i32
  }
  func.func @transform_1(%arg0: i32) -> (i32, i32) {
    %c0_i32 = arith.constant 0 : i32
    %c0_i32_0 = arith.constant 0 : i32
    %c0_i32_1 = arith.constant 0 : i32
    return %c0_i32, %c0_i32_0 : i32, i32
  }
  func.func @transform_2(%arg0: i32) -> (i32, i32) {
    %c0_i32 = arith.constant 0 : i32
    %c0_i32_0 = arith.constant 0 : i32
    %c0_i32_1 = arith.constant 0 : i32
    return %c0_i32, %c0_i32_0 : i32, i32
  }
  func.func @transform_3(%arg0: i32) -> (i32, i32) {
    %c0_i32 = arith.constant 0 : i32
    %c0_i32_0 = arith.constant 0 : i32
    return %arg0, %c0_i32 : i32, i32
  }
  func.func @transform_4(%arg0: i32) -> (i32, i32) {
    %c0_i32 = arith.constant 0 : i32
    %c0_i32_0 = arith.constant 0 : i32
    %c0_i32_1 = arith.constant 0 : i32
    return %c0_i32, %c0_i32_0 : i32, i32
  }
  func.func @transform_5(%arg0: i32) -> (i32, i32) {
    %c0_i32 = arith.constant 0 : i32
    %c0_i32_0 = arith.constant 0 : i32
    %c0_i32_1 = arith.constant 0 : i32
    return %c0_i32, %c0_i32_0 : i32, i32
  }
  func.func @transform_6(%arg0: i32) -> (i32, i32) {
    %c0_i32 = arith.constant 0 : i32
    %c0_i32_0 = arith.constant 0 : i32
    return %arg0, %c0_i32 : i32, i32
  }
}

</mosaic_0001>

<bundles_post_ra>
// kernel: basic_block_forward.5
= control target key start
LH: loop header
LB: loop body
LE: loop exit
PB: predicated region body
PF: predicated region fallthrough
CT: control target
= control target key end

     0   :  { %s385_s12 = smov 0   ;;  %s415_s0 = inlined_call_operand.vmem [shape: bf16[128,128], index: 0, kind: input, shape index: {}]   ;;  %s416_s1 = inlined_call_operand.vmem [shape: f32[1,128], index: 1, kind: input, shape index: {}]   ;;  %s417_s2 = inlined_call_operand.vmem [shape: f32[1,128], index: 2, kind: input, shape index: {}]   ;;  %s418_s3 = inlined_call_operand.vmem [shape: bf16[128,128], index: 3, kind: output, shape index: {}]  }
   0x1 LB: > { %s294_s13 = sadd.s32 4294967295, %s363_s12   ;;  %p298_p0 = scmp.ge.s32.totalorder %s363_s12, 1  ;;  %s363_s12 = sphi %s385_s12, %s13_s12  }
   0x2   : > { %p138_p1 = scmp.lt.s32.totalorder %s363_s12, 3 }
   0x4   : > { %p139_p2 = pnand %p298_p0, %p138_p1 }
   0x5   : > { %s299_s14 = sshll.u32 (!%p139_p2), %s294_s13, 3 }
   0x6   : > { %142 = sbr.rel (%p139_p2) target bundleno = 29 (0x1d), region = 32  ;;  %p163_p3 = scmp.lt.s32.totalorder (!%p139_p2), %s299_s14, 15 }
   0xb   : > { %s420_s14 = smov (!%p163_p3, %s299_s14), 15  ;;  %v355_v0 = vld [vmem:[%s416_s1] ss:$0 sm:$0xff] }
   0xc   : > { %s300_s15 = sshll.u32 %s420_s14, 2  ;;  %v356_v6 = vld [vmem:[%s417_s2] ss:$0 sm:$0xff] }
   0xd   : > { %s166_s18 = scalar_lea.vmem %s415_s0, %s300_s15  ;;  %s172_s25 = scalar_lea.vmem %s418_s3, %s300_s15 }
   0xe   : > { %v306_v1 = vld [vmem:[%s166_s18] sm:$0xff]   ;;  %v341_v2 = vld [vmem:[%s166_s18 + $0x8] sm:$0xff]   ;;  %v342_v3 = vld [vmem:[%s166_s18 + $0x10] sm:$0xff]  }
   0xf   : > { %v307_v4 = vunpack.c.l.bf16 %v306_v1  ;;  %v308_v5 = vunpack.c.h.bf16 %v306_v1  ;;  %v311_v7 = vunpack.c.l.bf16 %v341_v2  ;;  %v312_v8 = vunpack.c.h.bf16 %v341_v2  ;;  %v343_v9 = vld [vmem:[%s166_s18 + $0x18] sm:$0xff]  }
  0x10   : > { %v315_v10 = vunpack.c.l.bf16 %v342_v3  ;;  %v316_v11 = vunpack.c.h.bf16 %v342_v3  ;;  %v319_v12 = vunpack.c.l.bf16 %v343_v9  ;;  %v320_v13 = vunpack.c.h.bf16 %v343_v9 }
  0x11   : > { %v194_v14 = vmul.f32 %v355_v0, %v307_v4  ;;  %v195_v15 = vmul.f32 %v355_v0, %v308_v5  ;;  %v196_v16 = vmul.f32 %v355_v0, %v311_v7  ;;  %v197_v17 = vmul.f32 %v355_v0, %v312_v8 }
  0x12   : > { %v198_v18 = vmul.f32 %v355_v0, %v315_v10  ;;  %v199_v19 = vmul.f32 %v355_v0, %v316_v11  ;;  %v200_v20 = vmul.f32 %v355_v0, %v319_v12  ;;  %v201_v21 = vmul.f32 %v355_v0, %v320_v13 }
  0x13   : > { %v206_v22 = vadd.f32 %v356_v6, %v194_v14  ;;  %v207_v23 = vadd.f32 %v356_v6, %v195_v15  ;;  %v208_v24 = vadd.f32 %v356_v6, %v196_v16  ;;  %v209_v25 = vadd.f32 %v356_v6, %v197_v17 }
  0x14   : > { %v210_v26 = vadd.f32 %v356_v6, %v198_v18  ;;  %v211_v27 = vadd.f32 %v356_v6, %v199_v19  ;;  %v212_v28 = vadd.f32 %v356_v6, %v200_v20  ;;  %v213_v29 = vadd.f32 %v356_v6, %v201_v21 }
  0x15   : > { %v214_v30 = vmax.f32 %v206_v22, 0.0  ;;  %v215_v31 = vmax.f32 %v207_v23, 0.0  ;;  %v216_v32 = vmax.f32 %v208_v24, 0.0  ;;  %v217_v33 = vmax.f32 %v209_v25, 0.0 }
  0x16   : > { %v218_v34 = vmax.f32 %v210_v26, 0.0  ;;  %v219_v35 = vmax.f32 %v211_v27, 0.0  ;;  %v220_v36 = vmax.f32 %v212_v28, 0.0  ;;  %v221_v37 = vmax.f32 %v213_v29, 0.0 }
  0x17   : > { %v324_v38 = vpack.c.bf16 %v215_v31, %v214_v30  ;;  %v329_v39 = vpack.c.bf16 %v217_v33, %v216_v32 }
  0x18   : > { %v334_v40 = vpack.c.bf16 %v219_v35, %v218_v34  ;;  %v339_v41 = vpack.c.bf16 %v221_v37, %v220_v36 }
  0x19   : > { %325 = vst [vmem:[%s172_s25] sm:$0xff] %v324_v38  }
  0x1a   : > { %344 = vst [vmem:[%s172_s25 + $0x8] sm:$0xff] %v329_v39  }
  0x1b   : > { %345 = vst [vmem:[%s172_s25 + $0x10] sm:$0xff] %v334_v40  }
  0x1c   : > { %346 = vst [vmem:[%s172_s25 + $0x18] sm:$0xff] %v339_v41  }
  0x1d PF: > { %s13_s12 = sadd.s32 1, %s363_s12  }
  0x1e   : > { %p10_p4 = scmp.ge.s32.totalorder %s13_s12, 4  }
  0x20   :  { %12 = sbr.rel (!%p10_p4) target bundleno = 1 (0x1), region = 62 }

// kernel: basic_block_forward.4
= control target key start
LH: loop header
LB: loop body
LE: loop exit
PB: predicated region body
PF: predicated region fallthrough
CT: control target
= control target key end

     0   :  { %s617_s12 = smov 0   ;;  %s619_s13 = smov 0   ;;  %s681_s0 = inlined_call_operand.vmem [shape: bf16[128,48], index: 0, kind: input, shape index: {}]   ;;  %s682_s1 = inlined_call_operand.vmem [shape: bf16[48,128], index: 1, kind: input, shape index: {}]   ;;  %s683_s2 = inlined_call_operand.vmem [shape: bf16[128,128], index: 2, kind: output, shape index: {0}]   ;;  %s684_s3 = inlined_call_operand.vmem [shape: f32[16,128], index: 3, kind: output, shape index: {1}]  }
   0x1   :  { %s621_s14 = smov 0  }
   0x2 LB: > { %s26_s15 = sadd.s32 1, %s590_s13  ;;  %p468_p0 = scmp.ge.s32.totalorder %s594_s14, 1  ;;  %s594_s14 = sphi %s621_s14, %s14_s14   ;;  %s590_s13 = sphi %s619_s13, %s686_s13   ;;  %s586_s12 = sphi %s617_s12, %s685_s12  }
   0x3   : > { %p28_p1 = scmp.ge.s32.totalorder %s26_s15, 2  ;;  %p159_p2 = scmp.lt.s32.totalorder %s594_s14, 3 }
   0x5   : > { %s688_s15 = smov (%p28_p1, %s26_s15), 0  ;;  %p160_p3 = pnand %p468_p0, %p159_p2 }
   0x6   : > { %s469_s18 = sshll.u32 (!%p160_p3), %s586_s12, 3  ;;  %p205_p5 = scmp.lt.s32.totalorder (!%p160_p3), %s586_s12, 1 }
   0x7   : > { %163 = sbr.rel (%p160_p3) target bundleno = 189 (0xbd), region = 28  ;;  %p191_p4 = scmp.lt.s32.totalorder (!%p160_p3), %s469_s18, 15 }
   0xc   : > { %v514_v0 = vld [vmem:[%s682_s1 + $0x10] sm:$0xff]  ;;  %v513_v1 = vld [vmem:[%s682_s1 + $0x8] sm:$0xff]  ;;  %s690_s18 = smov (!%p191_p4, %s469_s18), 15  ;;  %v512_v2 = vld [vmem:[%s682_s1] sm:$0xff]  ;;  %vm267_vm0 = vcmask 392192   ;;  %s692_s12 = smov (!%p205_p5, %s586_s12), 1 }
   0xd   : > { %285 = vmatpush.bf16.msra.mxu0 %v514_v0  ;;  %538 = vmatpush.bf16.msra.mxu1 %v514_v0  ;;  %s470_s21 = sshll.u32 %s690_s18, 2  ;;  %s473_s27 = sshll.u32 %s692_s12, 3  ;;  %v596_v7 = vmov 0.0  }
   0xe   : > { %539 = vmatpush.bf16.msra.mxu2 %v514_v0  ;;  %540 = vmatpush.bf16.msra.mxu3 %v514_v0  ;;  %s194_s26 = scalar_lea.vmem %s681_s0, %s470_s21  ;;  %s660_s30 = scalar_lea.vmem %s684_s3, %s473_s27 }
   0xf   : > { %v508_v3 = vld [vmem:[%s194_s26] sm:$0xff]  ;;  %v509_v4 = vld [vmem:[%s194_s26 + $0x8] sm:$0xff]  ;;  %v510_v5 = vld [vmem:[%s194_s26 + $0x10] sm:$0xff]  ;;  %214 = vst [vmem:[%s660_s30] sm:$0xff] %v596_v7  ;;  %s202_s6 = scalar_lea.vmem %s683_s2, %s470_s21 }
  0x10   : > { %v511_v6 = vld [vmem:[%s194_s26 + $0x18] sm:$0xff] }
  0x11   : > { %286 = vmatpush.bf16.msra.mxu0 %v513_v1  ;;  %541 = vmatpush.bf16.msra.mxu1 %v513_v1 }
  0x12   : > { %542 = vmatpush.bf16.msra.mxu2 %v513_v1  ;;  %543 = vmatpush.bf16.msra.mxu3 %v513_v1 }
  0x15   : > { %287 = vmatpush.bf16.msra.mxu0 %v512_v2  ;;  %544 = vmatpush.bf16.msra.mxu1 %v512_v2 }
  0x16   : > { %545 = vmatpush.bf16.msra.mxu2 %v512_v2  ;;  %546 = vmatpush.bf16.msra.mxu3 %v512_v2  ;;  %v325_v51 = vld [vmem:[%s660_s30] sm:$0x1]  ;;  %v341_v54 = vld [vmem:[%s660_s30 + $0x1] sm:$0x1] }
  0x18   : > { %502 = vmatmul.msk.bf16.vlgmr.msra.gmra.mxu0 %vm267_vm0, %v508_v3  ;;  %503 = vmatmul.msk.bf16.vlgmr.msra.gmra.mxu1 %vm267_vm0, %v509_v4 }
  0x19   : > { %504 = vmatmul.msk.bf16.vlgmr.msra.gmra.mxu2 %vm267_vm0, %v510_v5  ;;  %505 = vmatmul.msk.bf16.vlgmr.msra.gmra.mxu3 %vm267_vm0, %v511_v6 }
  0x95   : > { %v289_v8 = vpop.f32.mrf.mxu0  ;;  %v294_v9 = vpop.f32.mrf.mxu1 }
  0x96   : > { %v342_v12 = vmul.f32 %v289_v8, %v289_v8  ;;  %v344_v19 = vmul.f32 %v294_v9, %v294_v9 }
  0x9c   : > { %v299_v10 = vpop.f32.mrf.mxu2  ;;  %v304_v11 = vpop.f32.mrf.mxu3 }
  0x9d   : > { %v291_v13 = vpop.f32.mrf.mxu0  ;;  %v296_v14 = vpop.f32.mrf.mxu1  ;;  %v346_v25 = vmul.f32 %v299_v10, %v299_v10  ;;  %v348_v35 = vmul.f32 %v304_v11, %v304_v11 }
  0x9e   : > { %v518_v15 = vpack.c.bf16 %v291_v13, %v289_v8  ;;  %v326_v16 = vadd.f32 %v291_v13, %v289_v8  ;;  %v343_v17 = vmul.f32 %v291_v13, %v291_v13  ;;  %v523_v18 = vpack.c.bf16 %v296_v14, %v294_v9 }
  0x9f   : > { %v345_v23 = vmul.f32 %v296_v14, %v296_v14 }
  0xa0   : > { %519 = vst [vmem:[%s202_s6] sm:$0xff] %v518_v15   ;;  %v350_v20 = vadd.f32 %v343_v17, %v342_v12  ;;  %v327_v21 = vadd.f32 %v326_v16, %v294_v9 }
  0xa1   : > { %535 = vst [vmem:[%s202_s6 + $0x8] sm:$0xff] %v523_v18  }
  0xa2   : > { %v328_v22 = vadd.f32 %v327_v21, %v296_v14  ;;  %v351_v24 = vadd.f32 %v350_v20, %v344_v19 }
  0xa4   : > { %v352_v26 = vadd.f32 %v351_v24, %v345_v23  ;;  %v301_v27 = vpop.f32.mrf.mxu2  ;;  %v329_v28 = vadd.f32 %v328_v22, %v299_v10  ;;  %v306_v29 = vpop.f32.mrf.mxu3 }
  0xa5   : > { %v528_v30 = vpack.c.bf16 %v301_v27, %v299_v10  ;;  %v533_v31 = vpack.c.bf16 %v306_v29, %v304_v11  ;;  %v347_v33 = vmul.f32 %v301_v27, %v301_v27  ;;  %v349_v39 = vmul.f32 %v306_v29, %v306_v29 }
  0xa6   : > { %v330_v32 = vadd.f32 %v329_v28, %v301_v27  ;;  %v353_v34 = vadd.f32 %v352_v26, %v346_v25 }
  0xa7   : > { %536 = vst [vmem:[%s202_s6 + $0x10] sm:$0xff] %v528_v30  }
  0xa8   : > { %v354_v36 = vadd.f32 %v353_v34, %v347_v33  ;;  %537 = vst [vmem:[%s202_s6 + $0x18] sm:$0xff] %v533_v31   ;;  %v331_v37 = vadd.f32 %v330_v32, %v304_v11 }
  0xaa   : > { %v332_v38 = vadd.f32 %v331_v37, %v306_v29  ;;  %v355_v40 = vadd.f32 %v354_v36, %v348_v35 }
  0xac   : > { %v333_v41 = vrot.slane %v332_v38, 4  ;;  %v356_v42 = vadd.f32 %v355_v40, %v349_v39 }
  0xae   : > { %v334_v43 = vadd.f32 %v333_v41, %v332_v38  ;;  %v357_v44 = vrot.slane %v356_v42, 4 }
  0xb0   : > { %v335_v45 = vrot.slane %v334_v43, 2  ;;  %v358_v46 = vadd.f32 %v357_v44, %v356_v42 }
  0xb2   : > { %v336_v47 = vadd.f32 %v335_v45, %v334_v43  ;;  %v359_v48 = vrot.slane %v358_v46, 2 }
  0xb4   : > { %v337_v49 = vrot.slane %v336_v47, 1  ;;  %v360_v50 = vadd.f32 %v359_v48, %v358_v46 }
  0xb6   : > { %v338_v52 = vadd.f32 %v337_v49, %v336_v47  ;;  %v361_v53 = vrot.slane %v360_v50, 1 }
  0xb8   : > { %v339_v55 = vadd.f32 %v338_v52, %v325_v51  ;;  %v362_v56 = vadd.f32 %v361_v53, %v360_v50 }
  0xba   : > { %340 = vst [vmem:[%s660_s30] sm:$0x1] %v339_v55  ;;  %v363_v57 = vadd.f32 %v362_v56, %v341_v54 }
  0xbc   : > { %364 = vst [vmem:[%s660_s30 + $0x1] sm:$0x1] %v363_v57 }
  0xbd PF: > { %s14_s14 = sadd.s32 1, %s594_s14   ;;  %s685_s12 = smov %s590_s13 }
  0xbe   : > { %p11_p6 = scmp.ge.s32.totalorder %s14_s14, 4   ;;  %s686_s13 = smov %s688_s15 }
  0xc0   :  { %13 = sbr.rel (!%p11_p6) target bundleno = 2 (0x2), region = 74 }

// kernel: basic_block_forward.7
= control target key start
LH: loop header
LB: loop body
LE: loop exit
PB: predicated region body
PF: predicated region fallthrough
CT: control target
= control target key end

     0   :  { %s586_s21 = smov 0   ;;  %s665_s0 = inlined_call_operand.vmem [shape: bf16[128,128], index: 0, kind: input, shape index: {}]   ;;  %s666_s1 = inlined_call_operand.vmem [shape: f32[1,128], index: 1, kind: input, shape index: {}]   ;;  %s667_s2 = inlined_call_operand.vmem [shape: f32[1,128], index: 2, kind: input, shape index: {}]   ;;  %s668_s3 = inlined_call_operand.vmem [shape: bf16[128,128], index: 3, kind: input, shape index: {}]   ;;  %s669_s4 = inlined_call_operand.vmem [shape: f32[1,128], index: 4, kind: input, shape index: {}]   ;;  %s670_s5 = inlined_call_operand.vmem [shape: f32[1,128], index: 5, kind: input, shape index: {}]   ;;  %s671_s6 = inlined_call_operand.vmem [shape: bf16[128,128], index: 6, kind: output, shape index: {}]  }
   0x1 LB: > { %s457_s22 = sadd.s32 4294967295, %s549_s21   ;;  %p461_p0 = scmp.ge.s32.totalorder %s549_s21, 1  ;;  %s549_s21 = sphi %s586_s21, %s16_s21  }
   0x2   : > { %p224_p1 = scmp.lt.s32.totalorder %s549_s21, 3 }
   0x4   : > { %p225_p2 = pnand %p461_p0, %p224_p1 }
   0x5   : > { %s462_s23 = sshll.u32 (!%p225_p2), %s457_s22, 3 }
   0x6   : > { %228 = sbr.rel (%p225_p2) target bundleno = 40 (0x28), region = 44  ;;  %p260_p3 = scmp.lt.s32.totalorder (!%p225_p2), %s462_s23, 15 }
   0xb   : > { %s673_s23 = smov (!%p260_p3, %s462_s23), 15  ;;  %v611_v0 = vld [vmem:[%s666_s1] ss:$0 sm:$0xff] }
   0xc   : > { %s594_s24 = sshll.u32 %s673_s23, 2  ;;  %v618_v3 = vld [vmem:[%s669_s4] ss:$0 sm:$0xff] }
   0xd   : > { %s600_s27 = scalar_lea.vmem %s665_s0, %s594_s24  ;;  %s606_s30 = scalar_lea.vmem %s668_s3, %s594_s24  ;;  %v624_v7 = vld [vmem:[%s667_s2] ss:$0 sm:$0xff] }
   0xe   : > { %v471_v1 = vld [vmem:[%s600_s27] sm:$0xff]   ;;  %v522_v2 = vld [vmem:[%s600_s27 + $0x8] sm:$0xff]   ;;  %v523_v15 = vld [vmem:[%s600_s27 + $0x10] sm:$0xff]   ;;  %s275_s17 = scalar_lea.vmem %s671_s6, %s594_s24 }
   0xf   : > { %v472_v4 = vunpack.c.l.bf16 %v471_v1  ;;  %v473_v5 = vunpack.c.h.bf16 %v471_v1  ;;  %v487_v6 = vld [vmem:[%s606_s30] sm:$0xff]   ;;  %v476_v8 = vunpack.c.l.bf16 %v522_v2  ;;  %v477_v9 = vunpack.c.h.bf16 %v522_v2  ;;  %v525_v10 = vld [vmem:[%s606_s30 + $0x8] sm:$0xff]   ;;  %v526_v20 = vld [vmem:[%s606_s30 + $0x10] sm:$0xff]  }
  0x10   : > { %v488_v11 = vunpack.c.l.bf16 %v487_v6  ;;  %v489_v12 = vunpack.c.h.bf16 %v487_v6  ;;  %v492_v13 = vunpack.c.l.bf16 %v525_v10  ;;  %v493_v14 = vunpack.c.h.bf16 %v525_v10  ;;  %v542_v27 = vld [vmem:[%s670_s5] ss:$0 sm:$0xff]  ;;  %v524_v34 = vld [vmem:[%s600_s27 + $0x18] sm:$0xff]  }
  0x11   : > { %v313_v16 = vmul.f32 %v611_v0, %v472_v4  ;;  %v314_v17 = vmul.f32 %v611_v0, %v473_v5  ;;  %v315_v18 = vmul.f32 %v611_v0, %v476_v8  ;;  %v316_v19 = vmul.f32 %v611_v0, %v477_v9  ;;  %v527_v47 = vld [vmem:[%s606_s30 + $0x18] sm:$0xff]  }
  0x12   : > { %v337_v21 = vmul.f32 %v618_v3, %v488_v11  ;;  %v338_v22 = vmul.f32 %v618_v3, %v489_v12  ;;  %v339_v23 = vmul.f32 %v618_v3, %v492_v13  ;;  %v340_v24 = vmul.f32 %v618_v3, %v493_v14 }
  0x13   : > { %v325_v25 = vadd.f32 %v624_v7, %v313_v16  ;;  %v326_v26 = vadd.f32 %v624_v7, %v314_v17  ;;  %v327_v28 = vadd.f32 %v624_v7, %v315_v18  ;;  %v328_v29 = vadd.f32 %v624_v7, %v316_v19 }
  0x14   : > { %v480_v30 = vunpack.c.l.bf16 %v523_v15  ;;  %v481_v31 = vunpack.c.h.bf16 %v523_v15  ;;  %v496_v32 = vunpack.c.l.bf16 %v526_v20  ;;  %v497_v33 = vunpack.c.h.bf16 %v526_v20 }
  0x15   : > { %v345_v35 = vadd.f32 %v337_v21, %v325_v25  ;;  %v346_v36 = vadd.f32 %v338_v22, %v326_v26  ;;  %v347_v37 = vadd.f32 %v339_v23, %v327_v28  ;;  %v348_v38 = vadd.f32 %v340_v24, %v328_v29 }
  0x16   : > { %v317_v39 = vmul.f32 %v611_v0, %v480_v30  ;;  %v318_v40 = vmul.f32 %v611_v0, %v481_v31  ;;  %v341_v41 = vmul.f32 %v618_v3, %v496_v32  ;;  %v342_v42 = vmul.f32 %v618_v3, %v497_v33 }
  0x17   : > { %v357_v43 = vadd.f32 %v542_v27, %v345_v35  ;;  %v358_v44 = vadd.f32 %v542_v27, %v346_v36  ;;  %v359_v45 = vadd.f32 %v542_v27, %v347_v37  ;;  %v360_v46 = vadd.f32 %v542_v27, %v348_v38 }
  0x18   : > { %v329_v48 = vadd.f32 %v624_v7, %v317_v39  ;;  %v330_v49 = vadd.f32 %v624_v7, %v318_v40  ;;  %v484_v50 = vunpack.c.l.bf16 %v524_v34  ;;  %v485_v51 = vunpack.c.h.bf16 %v524_v34 }
  0x19   : > { %v365_v52 = vmax.f32 %v357_v43, 0.0  ;;  %v366_v53 = vmax.f32 %v358_v44, 0.0  ;;  %v367_v54 = vmax.f32 %v359_v45, 0.0  ;;  %v368_v55 = vmax.f32 %v360_v46, 0.0 }
  0x1a   : > { %v349_v56 = vadd.f32 %v341_v41, %v329_v48  ;;  %v350_v57 = vadd.f32 %v342_v42, %v330_v49  ;;  %v500_v58 = vunpack.c.l.bf16 %v527_v47  ;;  %v501_v59 = vunpack.c.h.bf16 %v527_v47 }
  0x1b   : > { %v505_v60 = vpack.c.bf16 %v366_v53, %v365_v52  ;;  %v510_v61 = vpack.c.bf16 %v368_v55, %v367_v54  ;;  %v319_v62 = vmul.f32 %v611_v0, %v484_v50  ;;  %v320_v63 = vmul.f32 %v611_v0, %v485_v51 }
  0x1c   : > { %v361_v1 = vadd.f32 %v542_v27, %v349_v56  ;;  %v362_v2 = vadd.f32 %v542_v27, %v350_v57  ;;  %v343_v4 = vmul.f32 %v618_v3, %v500_v58  ;;  %v344_v5 = vmul.f32 %v618_v3, %v501_v59 }
  0x1d   : > { %506 = vst [vmem:[%s275_s17] sm:$0xff] %v505_v60   ;;  %v331_v6 = vadd.f32 %v624_v7, %v319_v62  ;;  %v332_v8 = vadd.f32 %v624_v7, %v320_v63 }
  0x1e   : > { %528 = vst [vmem:[%s275_s17 + $0x8] sm:$0xff] %v510_v61   ;;  %v369_v9 = vmax.f32 %v361_v1, 0.0  ;;  %v370_v10 = vmax.f32 %v362_v2, 0.0 }
  0x1f   : > { %v351_v11 = vadd.f32 %v343_v4, %v331_v6  ;;  %v352_v12 = vadd.f32 %v344_v5, %v332_v8 }
  0x20   : > { %v515_v13 = vpack.c.bf16 %v370_v10, %v369_v9 }
  0x21   : > { %v363_v14 = vadd.f32 %v542_v27, %v351_v11  ;;  %v364_v15 = vadd.f32 %v542_v27, %v352_v12 }
  0x22   : > { %529 = vst [vmem:[%s275_s17 + $0x10] sm:$0xff] %v515_v13  }
  0x23   : > { %v371_v0 = vmax.f32 %v363_v14, 0.0  ;;  %v372_v16 = vmax.f32 %v364_v15, 0.0 }
  0x25   : > { %v520_v17 = vpack.c.bf16 %v372_v16, %v371_v0 }
  0x27   : > { %530 = vst [vmem:[%s275_s17 + $0x18] sm:$0xff] %v520_v17  }
  0x28 PF: > { %s16_s21 = sadd.s32 1, %s549_s21  }
  0x29   : > { %p13_p4 = scmp.ge.s32.totalorder %s16_s21, 4  }
  0x2b   :  { %15 = sbr.rel (!%p13_p4) target bundleno = 1 (0x1), region = 77 }

// kernel: basic_block_forward.6
= control target key start
LH: loop header
LB: loop body
LE: loop exit
PB: predicated region body
PF: predicated region fallthrough
CT: control target
= control target key end

     0   :  { %s1097_s24 = smov 0   ;;  %s1099_s25 = smov 0   ;;  %s1201_s0 = inlined_call_operand.vmem [shape: bf16[128,80], index: 0, kind: input, shape index: {}]   ;;  %s1202_s1 = inlined_call_operand.vmem [shape: bf16[80,128], index: 1, kind: input, shape index: {}]   ;;  %s1203_s2 = inlined_call_operand.vmem [shape: bf16[128,16], index: 2, kind: input, shape index: {}]   ;;  %s1204_s3 = inlined_call_operand.vmem [shape: bf16[16,128], index: 3, kind: input, shape index: {}]   ;;  %s1205_s4 = inlined_call_operand.vmem [shape: bf16[128,128], index: 4, kind: output, shape index: {0}]   ;;  %s1206_s5 = inlined_call_operand.vmem [shape: bf16[128,128], index: 5, kind: output, shape index: {1}]   ;;  %s1207_s6 = inlined_call_operand.vmem [shape: f32[16,128], index: 6, kind: output, shape index: {2}]   ;;  %s1208_s7 = inlined_call_operand.vmem [shape: f32[16,128], index: 7, kind: output, shape index: {3}]  }
   0x1   :  { %s1101_s26 = smov 0  }
   0x2 LB: > { %s30_s27 = sadd.s32 1, %s1050_s25  ;;  %p864_p0 = scmp.ge.s32.totalorder %s1054_s26, 1  ;;  %s1054_s26 = sphi %s1101_s26, %s18_s26   ;;  %s1050_s25 = sphi %s1099_s25, %s1210_s25   ;;  %s1046_s24 = sphi %s1097_s24, %s1209_s24  }
   0x3   : > { %p32_p1 = scmp.ge.s32.totalorder %s30_s27, 2  ;;  %p280_p2 = scmp.lt.s32.totalorder %s1054_s26, 3 }
   0x5   : > { %s1212_s27 = smov (%p32_p1, %s30_s27), 0  ;;  %p281_p3 = pnand %p864_p0, %p280_p2 }
   0x6   : > { %s865_s9 = sshll.u32 (!%p281_p3), %s1046_s24, 3  ;;  %p366_p5 = scmp.lt.s32.totalorder (!%p281_p3), %s1046_s24, 1 }
   0x7   : > { %284 = sbr.rel (%p281_p3) target bundleno = 210 (0xd2), region = 36  ;;  %p336_p4 = scmp.lt.s32.totalorder (!%p281_p3), %s865_s9, 15 }
   0xc   : > { %v949_v0 = vld [vmem:[%s1202_s1 + $0x20] sm:$0xff]  ;;  %v948_v2 = vld [vmem:[%s1202_s1 + $0x18] sm:$0xff]  ;;  %s1214_s9 = smov (!%p336_p4, %s865_s9), 15  ;;  %vm527_vm0 = vcmask 130048   ;;  %v947_v3 = vld [vmem:[%s1202_s1 + $0x10] sm:$0xff]  ;;  %vm449_vm1 = vcmask 654336  }
   0xd   : > { %v954_v1 = vld [vmem:[%s1204_s3] sm:$0xff]  ;;  %465 = vmatpush.bf16.msra.mxu0 %v949_v0  ;;  %1001 = vmatpush.bf16.msra.mxu2 %v949_v0  ;;  %s1127_s12 = sshll.u32 %s1214_s9, 2  ;;  %v946_v6 = vld [vmem:[%s1202_s1 + $0x8] sm:$0xff]  ;;  %s1216_s24 = smov (!%p366_p5, %s1046_s24), 1  ;;  %v1056_v18 = vmov 0.0  }
   0xe   : > { %547 = vmatpush.bf16.msra.mxu1 %v954_v1  ;;  %1006 = vmatpush.bf16.msra.mxu3 %v954_v1  ;;  %s347_s15 = scalar_lea.vmem %s1203_s2, %s1127_s12  ;;  %v945_v7 = vld [vmem:[%s1202_s1] sm:$0xff]  ;;  %s339_s28 = scalar_lea.vmem %s1201_s0, %s1127_s12 }
   0xf   : > { %v950_v4 = vld [vmem:[%s347_s15] sm:$0xff]  ;;  %v951_v5 = vld [vmem:[%s347_s15 + $0x8] sm:$0xff]  ;;  %v943_v9 = vld [vmem:[%s339_s28 + $0x10] sm:$0xff]  ;;  %s873_s29 = sshll.u32 %s1216_s24, 3  ;;  %s1166_s24 = scalar_lea.vmem %s1206_s5, %s1127_s12 }
  0x10   : > { %v941_v8 = vld [vmem:[%s339_s28] sm:$0xff]  ;;  %v952_v10 = vld [vmem:[%s347_s15 + $0x10] sm:$0xff]  ;;  %v942_v11 = vld [vmem:[%s339_s28 + $0x8] sm:$0xff]  ;;  %s1155_s9 = scalar_lea.vmem %s1207_s6, %s873_s29  ;;  %s1160_s13 = scalar_lea.vmem %s1208_s7, %s873_s29 }
  0x11   : > { %466 = vmatpush.bf16.msra.mxu0 %v948_v2  ;;  %1002 = vmatpush.bf16.msra.mxu2 %v948_v2  ;;  %v944_v12 = vld [vmem:[%s339_s28 + $0x18] sm:$0xff]  ;;  %379 = vst [vmem:[%s1155_s9] sm:$0xff] %v1056_v18  ;;  %s1176_s18 = scalar_lea.vmem %s1205_s4, %s1127_s12 }
  0x12   : > { %935 = vmatmul.msk.bf16.vlgmr.msra.gmra.mxu1 %vm527_vm0, %v950_v4  ;;  %936 = vmatmul.msk.bf16.vlgmr.msra.gmra.mxu3 %vm527_vm0, %v951_v5  ;;  %v953_v13 = vld [vmem:[%s347_s15 + $0x18] sm:$0xff]  ;;  %380 = vst [vmem:[%s1160_s13] sm:$0xff] %v1056_v18 }
  0x15   : > { %467 = vmatpush.bf16.msra.mxu0 %v947_v3  ;;  %1003 = vmatpush.bf16.msra.mxu2 %v947_v3 }
  0x19   : > { %468 = vmatpush.bf16.msra.mxu0 %v946_v6  ;;  %1004 = vmatpush.bf16.msra.mxu2 %v946_v6 }
  0x1d   : > { %469 = vmatpush.bf16.msra.mxu0 %v945_v7  ;;  %1005 = vmatpush.bf16.msra.mxu2 %v945_v7 }
  0x20   : > { %911 = vmatmul.msk.bf16.vlgmr.msra.gmra.mxu0 %vm449_vm1, %v941_v8  ;;  %913 = vmatmul.msk.bf16.vlgmr.msra.gmra.mxu2 %vm449_vm1, %v943_v9 }
  0x22   : > { %937 = vmatmul.msk.bf16.gmra.mxu3 %vm527_vm0, %v952_v10 }
  0x30   : > { %912 = vmatmul.msk.bf16.gmra.mxu0 %vm449_vm1, %v942_v11  ;;  %914 = vmatmul.msk.bf16.gmra.mxu2 %vm449_vm1, %v944_v12 }
  0x32   : > { %938 = vmatmul.msk.bf16.gmra.mxu3 %vm527_vm0, %v953_v13 }
  0x8f   : > { %v549_v14 = vpop.f32.mrf.mxu1 }
  0x90   : > { %v658_v32 = vmul.f32 %v549_v14, %v549_v14 }
  0x95   : > { %v554_v15 = vpop.f32.mrf.mxu3 }
  0x96   : > { %v660_v48 = vmul.f32 %v554_v15, %v554_v15 }
  0x97   : > { %v551_v16 = vpop.f32.mrf.mxu1 }
  0x98   : > { %v978_v17 = vpack.c.bf16 %v551_v16, %v549_v14  ;;  %v642_v33 = vadd.f32 %v551_v16, %v549_v14  ;;  %v659_v34 = vmul.f32 %v551_v16, %v551_v16 }
  0x9a   : > { %979 = vst [vmem:[%s1166_s24] sm:$0xff] %v978_v17   ;;  %v643_v41 = vadd.f32 %v642_v33, %v554_v15  ;;  %v666_v42 = vadd.f32 %v659_v34, %v658_v32  ;;  %v601_v34 = vld [vmem:[%s1155_s9] sm:$0x1] }
  0x9c   : > { %v667_v55 = vadd.f32 %v666_v42, %v660_v48  ;;  %v657_v48 = vld [vmem:[%s1160_s13 + $0x1] sm:$0x1] }
  0x9d   : > { %v471_v19 = vpop.f32.mrf.mxu0  ;;  %v556_v20 = vpop.f32.mrf.mxu3 }
  0x9e   : > { %v983_v21 = vpack.c.bf16 %v556_v20, %v554_v15  ;;  %v618_v35 = vmul.f32 %v471_v19, %v471_v19  ;;  %v644_v49 = vadd.f32 %v643_v41, %v556_v20  ;;  %v661_v50 = vmul.f32 %v556_v20, %v556_v20 }
  0xa0   : > { %998 = vst [vmem:[%s1166_s24 + $0x8] sm:$0xff] %v983_v21   ;;  %v668_v61 = vadd.f32 %v667_v55, %v661_v50 }
  0xa3   : > { %v481_v22 = vpop.f32.mrf.mxu2 }
  0xa4   : > { %v622_v52 = vmul.f32 %v481_v22, %v481_v22 }
  0xa5   : > { %v473_v23 = vpop.f32.mrf.mxu0  ;;  %v559_v25 = vpop.f32.mrf.mxu3 }
  0xa6   : > { %v958_v24 = vpack.c.bf16 %v473_v23, %v471_v19  ;;  %v619_v30 = vmul.f32 %v473_v23, %v473_v23  ;;  %v602_v36 = vadd.f32 %v473_v23, %v471_v19  ;;  %v645_v56 = vadd.f32 %v644_v49, %v559_v25 }
  0xa7   : > { %v662_v57 = vmul.f32 %v559_v25, %v559_v25 }
  0xa8   : > { %959 = vst [vmem:[%s1176_s18] sm:$0xff] %v958_v24   ;;  %v626_v39 = vadd.f32 %v619_v30, %v618_v35 }
  0xa9   : > { %v669_v5 = vadd.f32 %v668_v61, %v662_v57 }
  0xab   : > { %v483_v26 = vpop.f32.mrf.mxu2 }
  0xac   : > { %v968_v27 = vpack.c.bf16 %v483_v26, %v481_v22  ;;  %v623_v58 = vmul.f32 %v483_v26, %v483_v26 }
  0xad   : > { %v476_v28 = vpop.f32.mrf.mxu0  ;;  %v561_v29 = vpop.f32.mrf.mxu3 }
  0xae   : > { %996 = vst [vmem:[%s1176_s18 + $0x10] sm:$0xff] %v968_v27   ;;  %v988_v31 = vpack.c.bf16 %v561_v29, %v559_v25  ;;  %v620_v37 = vmul.f32 %v476_v28, %v476_v28  ;;  %v603_v40 = vadd.f32 %v602_v36, %v476_v28  ;;  %v646_v62 = vadd.f32 %v645_v56, %v561_v29 }
  0xaf   : > { %v663_v63 = vmul.f32 %v561_v29, %v561_v29 }
  0xb0   : > { %999 = vst [vmem:[%s1166_s24 + $0x10] sm:$0xff] %v988_v31   ;;  %v627_v44 = vadd.f32 %v626_v39, %v620_v37  ;;  %v617_v39 = vld [vmem:[%s1155_s9 + $0x1] sm:$0x1] }
  0xb1   : > { %v670_v11 = vadd.f32 %v669_v5, %v663_v63 }
  0xb3   : > { %v486_v38 = vpop.f32.mrf.mxu2 }
  0xb4   : > { %v624_v1 = vmul.f32 %v486_v38, %v486_v38 }
  0xb5   : > { %v478_v43 = vpop.f32.mrf.mxu0  ;;  %v564_v51 = vpop.f32.mrf.mxu3 }
  0xb6   : > { %v963_v45 = vpack.c.bf16 %v478_v43, %v476_v28  ;;  %v604_v46 = vadd.f32 %v603_v40, %v478_v43  ;;  %v621_v47 = vmul.f32 %v478_v43, %v478_v43  ;;  %v664_v6 = vmul.f32 %v564_v51, %v564_v51  ;;  %v641_v40 = vld [vmem:[%s1160_s13] sm:$0x1] }
  0xb7   : > { %v647_v7 = vadd.f32 %v646_v62, %v564_v51 }
  0xb8   : > { %995 = vst [vmem:[%s1176_s18 + $0x8] sm:$0xff] %v963_v45   ;;  %v605_v53 = vadd.f32 %v604_v46, %v481_v22  ;;  %v628_v54 = vadd.f32 %v627_v44, %v621_v47  ;;  %v671_v17 = vadd.f32 %v670_v11, %v664_v6 }
  0xba   : > { %v629_v59 = vadd.f32 %v628_v54, %v622_v52  ;;  %v606_v60 = vadd.f32 %v605_v53, %v483_v26 }
  0xbb   : > { %v488_v0 = vpop.f32.mrf.mxu2 }
  0xbc   : > { %v973_v2 = vpack.c.bf16 %v488_v0, %v486_v38  ;;  %v607_v3 = vadd.f32 %v606_v60, %v486_v38  ;;  %v630_v4 = vadd.f32 %v629_v59, %v623_v58  ;;  %v625_v9 = vmul.f32 %v488_v0, %v488_v0 }
  0xbd   : > { %v566_v12 = vpop.f32.mrf.mxu3 }
  0xbe   : > { %997 = vst [vmem:[%s1176_s18 + $0x18] sm:$0xff] %v973_v2   ;;  %v608_v8 = vadd.f32 %v607_v3, %v488_v0  ;;  %v631_v10 = vadd.f32 %v630_v4, %v624_v1  ;;  %v993_v15 = vpack.c.bf16 %v566_v12, %v564_v51  ;;  %v648_v16 = vadd.f32 %v647_v7, %v566_v12 }
  0xbf   : > { %v665_v18 = vmul.f32 %v566_v12, %v566_v12 }
  0xc0   : > { %v609_v13 = vrot.slane %v608_v8, 4  ;;  %v632_v14 = vadd.f32 %v631_v10, %v625_v9  ;;  %1000 = vst [vmem:[%s1166_s24 + $0x18] sm:$0xff] %v993_v15   ;;  %v649_v21 = vrot.slane %v648_v16, 4 }
  0xc1   : > { %v672_v22 = vadd.f32 %v671_v17, %v665_v18 }
  0xc2   : > { %v610_v19 = vadd.f32 %v609_v13, %v608_v8  ;;  %v633_v20 = vrot.slane %v632_v14, 4  ;;  %v650_v25 = vadd.f32 %v649_v21, %v648_v16 }
  0xc3   : > { %v673_v26 = vrot.slane %v672_v22, 4 }
  0xc4   : > { %v611_v23 = vrot.slane %v610_v19, 2  ;;  %v634_v24 = vadd.f32 %v633_v20, %v632_v14  ;;  %v651_v29 = vrot.slane %v650_v25, 2 }
  0xc5   : > { %v674_v30 = vadd.f32 %v673_v26, %v672_v22 }
  0xc6   : > { %v612_v27 = vadd.f32 %v611_v23, %v610_v19  ;;  %v635_v28 = vrot.slane %v634_v24, 2  ;;  %v652_v33 = vadd.f32 %v651_v29, %v650_v25 }
  0xc7   : > { %v675_v35 = vrot.slane %v674_v30, 2 }
  0xc8   : > { %v613_v31 = vrot.slane %v612_v27, 1  ;;  %v636_v32 = vadd.f32 %v635_v28, %v634_v24  ;;  %v653_v38 = vrot.slane %v652_v33, 1 }
  0xc9   : > { %v676_v41 = vadd.f32 %v675_v35, %v674_v30 }
  0xca   : > { %v614_v36 = vadd.f32 %v613_v31, %v612_v27  ;;  %v637_v37 = vrot.slane %v636_v32, 1  ;;  %v654_v44 = vadd.f32 %v653_v38, %v652_v33 }
  0xcb   : > { %v677_v45 = vrot.slane %v676_v41, 1 }
  0xcc   : > { %v615_v42 = vadd.f32 %v614_v36, %v601_v34  ;;  %v638_v43 = vadd.f32 %v637_v37, %v636_v32  ;;  %v655_v47 = vadd.f32 %v654_v44, %v641_v40 }
  0xcd   : > { %v678_v49 = vadd.f32 %v677_v45, %v676_v41 }
  0xce   : > { %616 = vst [vmem:[%s1155_s9] sm:$0x1] %v615_v42  ;;  %v639_v46 = vadd.f32 %v638_v43, %v617_v39 }
  0xcf   : > { %656 = vst [vmem:[%s1160_s13] sm:$0x1] %v655_v47  ;;  %v679_v50 = vadd.f32 %v678_v49, %v657_v48 }
  0xd0   : > { %640 = vst [vmem:[%s1155_s9 + $0x1] sm:$0x1] %v639_v46 }
  0xd1   : > { %680 = vst [vmem:[%s1160_s13 + $0x1] sm:$0x1] %v679_v50 }
  0xd2 PF: > { %s18_s26 = sadd.s32 1, %s1054_s26   ;;  %s1209_s24 = smov %s1050_s25 }
  0xd3   : > { %p15_p6 = scmp.ge.s32.totalorder %s18_s26, 4   ;;  %s1210_s25 = smov %s1212_s27 }
  0xd5   :  { %17 = sbr.rel (!%p15_p6) target bundleno = 2 (0x2), region = 109 }

</bundles_post_ra>
